<compile_context>
chip_gen: v7x
topology: tpu7x:2x2x1
jax: 0.10.0
libtpu: 0.0.40
codegen_flags: <defaults>
</compile_context>

<pallas_src>
import functools

import jax
import jax.numpy as jnp
from jax.experimental import pallas as pl
from jax.experimental.pallas import tpu as pltpu


def _round_up(x, m):
    return (x + m - 1) // m * m


def _mlp_q_kernel(zt_ref, w1t_ref, b1t_ref, w2t_ref, b2t_ref, w3t_ref, b3_ref,
                  o_ref, *, compute_dtype):
    """One batch tile of the Q MLP, fully batch-on-lanes, entirely in VMEM.

    zt_ref:  (D,  TB)  concat(features, actions)^T tile   (D = 13)
    w1t_ref: (H1, D)   layer-1 weights, transposed
    b1t_ref: (H1, 1)
    w2t_ref: (H2, H1)  layer-2 weights, transposed
    b2t_ref: (H2, 1)
    w3t_ref: (1,  H2)  layer-3 weights, transposed
    b3_ref:  (1, 1)    layer-3 bias, SMEM scalar
    o_ref:   (1, TB)   q-values with batch on the lane axis (lane-dense store)
    """
    cdt = compute_dtype
    zt = zt_ref[...].astype(cdt)                                    # (D, TB)

    # Layer 1 (concat already fused in the wrapper):
    #   h1^T = relu(W1^T @ z^T + b1^T)                              -> (H1, TB)
    h1t = (jnp.dot(w1t_ref[...].astype(cdt), zt,
                   preferred_element_type=jnp.float32)
           + b1t_ref[...])
    h1t = jnp.maximum(h1t, 0.0)

    # Layer 2:  h2^T = relu(W2^T @ h1^T + b2^T)                     -> (H2, TB)
    h2t = (jnp.dot(w2t_ref[...].astype(cdt), h1t.astype(cdt),
                   preferred_element_type=jnp.float32)
           + b2t_ref[...])
    h2t = jnp.maximum(h2t, 0.0)

    # Layer 3:  q^T = tanh(W3^T @ h2^T + b3)                        -> (1, TB)
    qt = (jnp.dot(w3t_ref[...].astype(cdt), h2t.astype(cdt),
                  preferred_element_type=jnp.float32)
          + b3_ref[0, 0])
    o_ref[...] = jnp.tanh(qt).astype(o_ref.dtype)


@functools.partial(jax.jit, static_argnames=("compute_dtype", "block_batch"))
def multilayer_q_forward(features, actions, params, *,
                         compute_dtype=jnp.float32, block_batch=None):
    """features: (B, F), actions: (B, A); params as produced by init_params.

    compute_dtype: dtype of the MXU operands (accumulation / bias / ReLU /
      tanh always in f32).  Default f32 for exactness & portability; pass
      jnp.bfloat16 on real TPU hardware for higher MXU throughput.
    block_batch: rows per grid step; must be a positive multiple of 128.
    """
    w1, b1, w2, b2, w3, b3 = params
    B = features.shape[0]
    D = w1.shape[0]                       # 13 = feat_dim + act_dim
    if features.shape[1] + actions.shape[1] != D:
        raise ValueError("features/actions widths must sum to inp_dim")
    cdt = compute_dtype

    # One-time, tiny weight prep (< 100 KB): transpose for batch-on-lanes.
    w1t = w1.T.astype(cdt)                # (H1, D)
    w2t = w2.T.astype(cdt)                # (H2, H1)
    w3t = w3.T.astype(cdt)                # (1, H2)
    b1t = b1.T.astype(jnp.float32)        # (H1, 1)
    b2t = b2.T.astype(jnp.float32)        # (H2, 1)
    b3s = b3.astype(jnp.float32).reshape(1, 1)   # SMEM scalar

    # Fused concat + lane-dense orientation: z^T = [features | actions]^T.
    zt = jnp.concatenate([features, actions], axis=-1).T.astype(cdt)  # (D, B)

    # Batch tiling.
    if block_batch is None:
        b128 = _round_up(max(B, 1), 128)
        if b128 <= 128:
            tb = 128
        else:
            # >= 2 blocks so the "parallel" axis spans both v7x TensorCores;
            # cap at 4096 rows (lane-dense tiles keep VMEM well under the
            # scoped defaults of v5e / v6e / v7x).
            tb = min(4096, _round_up((b128 + 1) // 2, 128))
    else:
        if block_batch <= 0 or block_batch % 128 != 0:
            raise ValueError("block_batch must be a positive multiple of 128")
        tb = block_batch

    B_pad = _round_up(max(B, 1), tb)
    if B_pad != B:
        zt = jnp.pad(zt, ((0, 0), (0, B_pad - B)))
    nb = B_pad // tb

    kernel = functools.partial(_mlp_q_kernel, compute_dtype=cdt)

    def const_spec(shape):
        # Same block every grid step -> weights stay VMEM-resident (no re-DMA).
        return pl.BlockSpec(shape, lambda i: (0, 0))

    out_t = pl.pallas_call(
        kernel,
        out_shape=jax.ShapeDtypeStruct((1, B_pad), jnp.float32),
        grid=(nb,),
        in_specs=[
            pl.BlockSpec((D, tb), lambda i: (0, i)),      # z^T tile (lane-dense)
            const_spec(w1t.shape),
            const_spec(b1t.shape),
            const_spec(w2t.shape),
            const_spec(b2t.shape),
            const_spec(w3t.shape),
            pl.BlockSpec(memory_space=pltpu.MemorySpace.SMEM),   # b3 scalar
        ],
        out_specs=pl.BlockSpec((1, tb), lambda i: (0, i)),
        compiler_params=pltpu.CompilerParams(
            dimension_semantics=("parallel",)),
    )(zt, w1t, b1t, w2t, b2t, w3t, b3s)

    # (1, B_pad) -> (B_pad, 1) is a free row-major reshape; drop padding rows.
    return out_t.reshape(B_pad, 1)[:B]


def init_params(key, inp_dim=13, hidden_dims=(64, 128), out_dim=1):
    """Deterministic init mimicking PyTorch nn.Linear default
    (uniform(-1/sqrt(fan_in), 1/sqrt(fan_in))). Weights stored as (in, out)."""
    dims = [inp_dim, *hidden_dims, out_dim]
    params = []
    for d_in, d_out in zip(dims[:-1], dims[1:]):
        key, kw, kb = jax.random.split(key, 3)
        bound = 1.0 / (d_in ** 0.5)
        w = jax.random.uniform(kw, (d_in, d_out), jnp.float32, -bound, bound)
        b = jax.random.uniform(kb, (1, d_out), jnp.float32, -bound, bound)
        params += [w, b]
    return tuple(params)


def _reference_forward(features, actions, params):
    """Pure-JAX f32 reference for correctness check (== PyTorch forward)."""
    w1, b1, w2, b2, w3, b3 = params
    z = jnp.concatenate([features, actions], axis=-1)
    h1 = jnp.maximum(z @ w1 + b1, 0.0)
    h2 = jnp.maximum(h1 @ w2 + b2, 0.0)
    return jnp.tanh(h2 @ w3 + b3)


if __name__ == "__main__":
    key = jax.random.PRNGKey(0)
    kf, ka, kp = jax.random.split(key, 3)

    batch, feat_dim, act_dim = 8, 11, 2          # 11 + 2 = inp_dim = 13
    features = jax.random.normal(kf, (batch, feat_dim), jnp.float32)
    actions = jax.random.normal(ka, (batch, act_dim), jnp.float32)
    params = init_params(kp)

    ref = _reference_forward(features, actions, params)

    # Default (f32 operands) path: single-tile grid.
    out = jax.block_until_ready(multilayer_q_forward(features, actions, params))
    assert out.shape == (batch, 1), out.shape
    assert jnp.allclose(out, ref, atol=1e-5, rtol=1e-5), "mismatch vs reference"

    # Multi-tile grid + padded tail (B not a multiple of the batch tile).
    kf2, ka2 = jax.random.split(jax.random.PRNGKey(1), 2)
    b2 = 200
    f2 = jax.random.normal(kf2, (b2, feat_dim), jnp.float32)
    a2 = jax.random.normal(ka2, (b2, act_dim), jnp.float32)
    ref2 = _reference_forward(f2, a2, params)
    out2 = jax.block_until_ready(
        multilayer_q_forward(f2, a2, params, block_batch=128))
    assert out2.shape == (b2, 1), out2.shape
    assert jnp.allclose(out2, ref2, atol=1e-5, rtol=1e-5), "gridded mismatch"

    # Default tiling on a batch > 128 (auto >=2 blocks for the parallel axis).
    kf3, ka3 = jax.random.split(jax.random.PRNGKey(2), 2)
    b3_ = 300
    f3 = jax.random.normal(kf3, (b3_, feat_dim), jnp.float32)
    a3 = jax.random.normal(ka3, (b3_, act_dim), jnp.float32)
    ref3 = _reference_forward(f3, a3, params)
    out3 = jax.block_until_ready(multilayer_q_forward(f3, a3, params))
    assert out3.shape == (b3_, 1), out3.shape
    assert jnp.allclose(out3, ref3, atol=1e-5, rtol=1e-5), "auto-tile mismatch"

    print("KERNEL_OK")
</pallas_src>

<mosaic_0001>
module attributes {stable_mosaic.version = 11 : i64} {
  func.func @_mlp_q_kernel(%arg0: i32, %arg1: memref<13x128xf32, #tpu.memory_space<vmem>>, %arg2: memref<64x13xf32, #tpu.memory_space<vmem>>, %arg3: memref<64x1xf32, #tpu.memory_space<vmem>>, %arg4: memref<128x64xf32, #tpu.memory_space<vmem>>, %arg5: memref<128x1xf32, #tpu.memory_space<vmem>>, %arg6: memref<1x128xf32, #tpu.memory_space<vmem>>, %arg7: memref<1x1xf32, #tpu.memory_space<smem>>, %arg8: memref<1x128xf32, #tpu.memory_space<vmem>>) attributes {dimension_semantics = [#tpu.dimension_semantics<parallel>], iteration_bounds = array<i64: 1>, scalar_prefetch = 0 : i64, scratch_operands = 0 : i64, tpu.core_type = #tpu.core_type<tc>, window_params = [{transform_indices = @transform_0, window_bounds = array<i64: 13, 128>}, {pipeline_mode = #tpu.pipeline_mode<synchronous>, transform_indices = @transform_1, window_bounds = array<i64: 64, 13>}, {pipeline_mode = #tpu.pipeline_mode<synchronous>, transform_indices = @transform_2, window_bounds = array<i64: 64, 1>}, {pipeline_mode = #tpu.pipeline_mode<synchronous>, transform_indices = @transform_3, window_bounds = array<i64: 128, 64>}, {pipeline_mode = #tpu.pipeline_mode<synchronous>, transform_indices = @transform_4, window_bounds = array<i64: 128, 1>}, {pipeline_mode = #tpu.pipeline_mode<synchronous>, transform_indices = @transform_5, window_bounds = array<i64: 1, 128>}, {transform_indices = @transform_6, window_bounds = array<i64: 1, 1>}, {transform_indices = @transform_7, window_bounds = array<i64: 1, 128>}]} {
    %c0 = arith.constant 0 : index
    %c0_0 = arith.constant 0 : index
    %0 = vector.load %arg1[%c0, %c0_0] : memref<13x128xf32, #tpu.memory_space<vmem>>, vector<13x128xf32>
    %c0_1 = arith.constant 0 : index
    %c0_2 = arith.constant 0 : index
    %1 = vector.load %arg2[%c0_1, %c0_2] : memref<64x13xf32, #tpu.memory_space<vmem>>, vector<64x13xf32>
    %cst = arith.constant dense<0.000000e+00> : vector<64x128xf32>
    %2 = tpu.matmul %1, %0, %cst {dimension_numbers = #tpu.dot_dimension_numbers<[1], [0], [0], [1], [0, 0, 1, 1], [], []>} : vector<64x13xf32>, vector<13x128xf32>, vector<64x128xf32> -> vector<64x128xf32>
    %c0_3 = arith.constant 0 : index
    %c0_4 = arith.constant 0 : index
    %3 = vector.load %arg3[%c0_3, %c0_4] : memref<64x1xf32, #tpu.memory_space<vmem>>, vector<64x1xf32>
    %4 = vector.broadcast %3 : vector<64x1xf32> to vector<64x128xf32>
    %5 = arith.addf %2, %4 : vector<64x128xf32>
    %cst_5 = arith.constant 0.000000e+00 : f32
    %6 = vector.broadcast %cst_5 : f32 to vector<64x128xf32>
    %7 = arith.maximumf %5, %6 : vector<64x128xf32>
    %c0_6 = arith.constant 0 : index
    %c0_7 = arith.constant 0 : index
    %8 = vector.load %arg4[%c0_6, %c0_7] : memref<128x64xf32, #tpu.memory_space<vmem>>, vector<128x64xf32>
    %cst_8 = arith.constant dense<0.000000e+00> : vector<128x128xf32>
    %9 = tpu.matmul %8, %7, %cst_8 {dimension_numbers = #tpu.dot_dimension_numbers<[1], [0], [0], [1], [0, 0, 1, 1], [], []>} : vector<128x64xf32>, vector<64x128xf32>, vector<128x128xf32> -> vector<128x128xf32>
    %c0_9 = arith.constant 0 : index
    %c0_10 = arith.constant 0 : index
    %10 = vector.load %arg5[%c0_9, %c0_10] : memref<128x1xf32, #tpu.memory_space<vmem>>, vector<128x1xf32>
    %11 = vector.broadcast %10 : vector<128x1xf32> to vector<128x128xf32>
    %12 = arith.addf %9, %11 : vector<128x128xf32>
    %cst_11 = arith.constant 0.000000e+00 : f32
    %13 = vector.broadcast %cst_11 : f32 to vector<128x128xf32>
    %14 = arith.maximumf %12, %13 : vector<128x128xf32>
    %c0_12 = arith.constant 0 : index
    %c0_13 = arith.constant 0 : index
    %15 = vector.load %arg6[%c0_12, %c0_13] : memref<1x128xf32, #tpu.memory_space<vmem>>, vector<1x128xf32>
    %cst_14 = arith.constant dense<0.000000e+00> : vector<1x128xf32>
    %16 = tpu.matmul %15, %14, %cst_14 {dimension_numbers = #tpu.dot_dimension_numbers<[1], [0], [0], [1], [0, 0, 1, 1], [], []>} : vector<1x128xf32>, vector<128x128xf32>, vector<1x128xf32> -> vector<1x128xf32>
    %c0_15 = arith.constant 0 : index
    %c0_16 = arith.constant 0 : index
    %17 = memref.load %arg7[%c0_15, %c0_16] : memref<1x1xf32, #tpu.memory_space<smem>>
    %18 = vector.broadcast %17 : f32 to vector<1x128xf32>
    %19 = arith.addf %16, %18 : vector<1x128xf32>
    %20 = math.tanh %19 : vector<1x128xf32>
    %c0_17 = arith.constant 0 : index
    %c0_18 = arith.constant 0 : index
    %21 = vector.load %arg8[%c0_17, %c0_18] : memref<1x128xf32, #tpu.memory_space<vmem>>, vector<1x128xf32>
    tpu.vector_store %arg8[%c0_17, %c0_18], %20 {strides = array<i32>} : memref<1x128xf32, #tpu.memory_space<vmem>>, vector<1x128xf32>,
    return
  }
  func.func @transform_0(%arg0: i32) -> (i32, i32) {
    %c0_i32 = arith.constant 0 : i32
    %c0_i32_0 = arith.constant 0 : i32
    return %c0_i32, %arg0 : i32, i32
  }
  func.func @transform_1(%arg0: i32) -> (i32, i32) {
    %c0_i32 = arith.constant 0 : i32
    %c0_i32_0 = arith.constant 0 : i32
    %c0_i32_1 = arith.constant 0 : i32
    return %c0_i32, %c0_i32_0 : i32, i32
  }
  func.func @transform_2(%arg0: i32) -> (i32, i32) {
    %c0_i32 = arith.constant 0 : i32
    %c0_i32_0 = arith.constant 0 : i32
    %c0_i32_1 = arith.constant 0 : i32
    return %c0_i32, %c0_i32_0 : i32, i32
  }
  func.func @transform_3(%arg0: i32) -> (i32, i32) {
    %c0_i32 = arith.constant 0 : i32
    %c0_i32_0 = arith.constant 0 : i32
    %c0_i32_1 = arith.constant 0 : i32
    return %c0_i32, %c0_i32_0 : i32, i32
  }
  func.func @transform_4(%arg0: i32) -> (i32, i32) {
    %c0_i32 = arith.constant 0 : i32
    %c0_i32_0 = arith.constant 0 : i32
    %c0_i32_1 = arith.constant 0 : i32
    return %c0_i32, %c0_i32_0 : i32, i32
  }
  func.func @transform_5(%arg0: i32) -> (i32, i32) {
    %c0_i32 = arith.constant 0 : i32
    %c0_i32_0 = arith.constant 0 : i32
    %c0_i32_1 = arith.constant 0 : i32
    return %c0_i32, %c0_i32_0 : i32, i32
  }
  func.func @transform_6(%arg0: i32) -> (i32, i32) {
    %c0_i32 = arith.constant 0 : i32
    %c0_i32_0 = arith.constant 0 : i32
    %c0_i32_1 = arith.constant 0 : i32
    return %c0_i32, %c0_i32_0 : i32, i32
  }
  func.func @transform_7(%arg0: i32) -> (i32, i32) {
    %c0_i32 = arith.constant 0 : i32
    %c0_i32_0 = arith.constant 0 : i32
    return %c0_i32, %arg0 : i32, i32
  }
}

</mosaic_0001>

<bundles_post_ra>
// kernel: multilayer_q_forward.1
= control target key start
LH: loop header
LB: loop body
LE: loop exit
PB: predicated region body
PF: predicated region fallthrough
CT: control target
= control target key end

     0   :  { %vm110_vm0 = vcmask 1044480   ;;  %vm85_vm1 = vcmask 105472   ;;  %vm850_vm2 = vmmov 1   ;;  %v851_v2 = vmov 0   ;;  %s1086_s0 = inlined_call_operand.vmem [shape: f32[13,128], index: 0, kind: input, shape index: {}]   ;;  %s1087_s1 = inlined_call_operand.vmem [shape: f32[64,13], index: 1, kind: input, shape index: {}]   ;;  %s1088_s2 = inlined_call_operand.vmem [shape: f32[64,1], index: 2, kind: input, shape index: {}]   ;;  %s1089_s4 = inlined_call_operand.vmem [shape: f32[128,1], index: 4, kind: input, shape index: {}]   ;;  %s1090_s3 = inlined_call_operand.vmem [shape: f32[128,64], index: 3, kind: input, shape index: {}]   ;;  %s1091_s5 = inlined_call_operand.vmem [shape: f32[1,128], index: 5, kind: input, shape index: {}]   ;;  %s1092_s6 = inlined_call_operand.<no memory space> [shape: f32[1,1], index: 6, kind: input, shape index: {}]   ;;  %s1093_s7 = inlined_call_operand.vmem [shape: f32[1,128], index: 7, kind: output, shape index: {}]  }
   0x1   :  { %v27_v0 = vld [vmem:[%s1086_s0] sm:$0xff]  ;;  %v28_v1 = vld [vmem:[%s1086_s0 + $0x8] sm:$0x1f]  ;;  %vm796_vm3 = vmpackc.low %vm110_vm0, %vm850_vm2  ;;  %846 = vset.pattern.permute.xlu0 %v851_v2  ;;  %847 = vset.pattern.permute.xlu1 %v851_v2  ;;  %vm339_vm4 = vcmask 523264   ;;  %vm853_vm5 = vmmov 0  }
   0x2   :  { %v795_v3 = vpack.c.bf16 %v28_v1, %v27_v0  ;;  %v29_v4 = vld [vmem:[%s1087_s1] sm:$0xff]  ;;  %v30_v6 = vld [vmem:[%s1087_s1 + $0x8] sm:$0xff]  ;;  %v39_v7 = vld [vmem:[%s1088_s2 + $0x10] sm:$0xff] }
   0x3   :  { %708 = vmatprep.mubr.msk.f32.mxu0 %vm85_vm1, %v29_v4  ;;  %v37_v5 = vld [vmem:[%s1088_s2] sm:$0xff]  ;;  %v31_v8 = vld [vmem:[%s1087_s1 + $0x10] sm:$0xff]  ;;  %57 = vperm.xlu1 %847, %v39_v7   ;;  %v38_v9 = vld [vmem:[%s1088_s2 + $0x8] sm:$0xff] }
   0x4   :  { %797 = vmatprep.subr.msk.bf16.mxu0 %vm796_vm3, %v795_v3  ;;  %47 = vperm.xlu0 %846, %v37_v5   ;;  %v40_v10 = vld [vmem:[%s1088_s2 + $0x18] sm:$0xff]  ;;  %v33_v12 = vld [vmem:[%s1087_s1 + $0x20] sm:$0xff]  ;;  %v42_v14 = vld [vmem:[%s1088_s2 + $0x28] sm:$0xff] }
   0x5   :  { %800 = vmatpush3.bf16.msk.msra.mxu0 %vm796_vm3, %v795_v3  ;;  %v32_v11 = vld [vmem:[%s1087_s1 + $0x18] sm:$0xff]  ;;  %v41_v13 = vld [vmem:[%s1088_s2 + $0x20] sm:$0xff]  ;;  %v34_v15 = vld [vmem:[%s1087_s1 + $0x28] sm:$0xff] }
   0x6   :  { %v35_v16 = vld [vmem:[%s1087_s1 + $0x30] sm:$0xff]  ;;  %v44_v18 = vld [vmem:[%s1088_s2 + $0x38] sm:$0xff]  ;;  %v243_v20 = vld [vmem:[%s1089_s4] sm:$0xff] }
   0x7   :  { %62 = vperm.xlu1 %847, %v40_v10   ;;  %v43_v17 = vld [vmem:[%s1088_s2 + $0x30] sm:$0xff]  ;;  %v36_v19 = vld [vmem:[%s1087_s1 + $0x38] sm:$0xff]  ;;  %v244_v21 = vld [vmem:[%s1089_s4 + $0x8] sm:$0xff] }
   0x8   :  { %709 = vmatmul.mubr.msk.f32.vlgmr.msra.gmra.mrb[0].mxu0 %vm85_vm1, %v30_v6  ;;  %52 = vperm.xlu0 %846, %v38_v9   ;;  %v245_v22 = vld [vmem:[%s1089_s4 + $0x10] sm:$0xff]  ;;  %v246_v23 = vld [vmem:[%s1089_s4 + $0x18] sm:$0xff]  ;;  %v247_v24 = vld [vmem:[%s1089_s4 + $0x20] sm:$0xff] }
   0x9   :  { %711 = vmatprep.mubr.msk.f32.mxu0 %vm85_vm1, %v31_v8  ;;  %v248_v25 = vld [vmem:[%s1089_s4 + $0x28] sm:$0xff]  ;;  %v249_v26 = vld [vmem:[%s1089_s4 + $0x30] sm:$0xff]  ;;  %v250_v27 = vld [vmem:[%s1089_s4 + $0x38] sm:$0xff] }
   0xa   :  { %v251_v28 = vld [vmem:[%s1089_s4 + $0x40] sm:$0xff]  ;;  %v252_v29 = vld [vmem:[%s1089_s4 + $0x48] sm:$0xff]  ;;  %v253_v30 = vld [vmem:[%s1089_s4 + $0x50] sm:$0xff] }
   0xb   :  { %72 = vperm.xlu1 %847, %v42_v14   ;;  %v254_v31 = vld [vmem:[%s1089_s4 + $0x58] sm:$0xff]  ;;  %v255_v32 = vld [vmem:[%s1089_s4 + $0x60] sm:$0xff]  ;;  %v256_v33 = vld [vmem:[%s1089_s4 + $0x68] sm:$0xff] }
   0xc   :  { %712 = vmatmul.mubr.msk.f32.gmra.mrb[2].mxu0 %vm85_vm1, %v32_v11  ;;  %67 = vperm.xlu0 %846, %v41_v13   ;;  %v257_v34 = vld [vmem:[%s1089_s4 + $0x70] sm:$0xff]  ;;  %v258_v35 = vld [vmem:[%s1089_s4 + $0x78] sm:$0xff]  ;;  %v227_v36 = vld [vmem:[%s1090_s3] sm:$0xff] }
   0xd   :  { %714 = vmatprep.mubr.msk.f32.mxu0 %vm85_vm1, %v33_v12  ;;  %736 = vmatprep.mubr.msk.f32.mxu1 %vm339_vm4, %v227_v36  ;;  %v228_v9 = vld [vmem:[%s1090_s3 + $0x8] sm:$0xff]  ;;  %v229_v10 = vld [vmem:[%s1090_s3 + $0x10] sm:$0xff]  ;;  %v230_v11 = vld [vmem:[%s1090_s3 + $0x18] sm:$0xff] }
   0xe   :  { %v231_v12 = vld [vmem:[%s1090_s3 + $0x20] sm:$0xff]  ;;  %v232_v13 = vld [vmem:[%s1090_s3 + $0x28] sm:$0xff]  ;;  %v233_v14 = vld [vmem:[%s1090_s3 + $0x30] sm:$0xff] }
   0xf   :  { %82 = vperm.xlu1 %847, %v44_v18   ;;  %v237_v18 = vld [vmem:[%s1090_s3 + $0x50] sm:$0xff] }
  0x10   :  { %715 = vmatmul.mubr.msk.f32.gmra.mrb[4].mxu0 %vm85_vm1, %v34_v15  ;;  %77 = vperm.xlu0 %846, %v43_v17   ;;  %v234_v15 = vld [vmem:[%s1090_s3 + $0x38] sm:$0xff]  ;;  %v236_v17 = vld [vmem:[%s1090_s3 + $0x48] sm:$0xff] }
  0x11   :  { %717 = vmatprep.mubr.msk.f32.mxu0 %vm85_vm1, %v35_v16  ;;  %v235_v16 = vld [vmem:[%s1090_s3 + $0x40] sm:$0xff] }
  0x13   :  { %266 = vperm.xlu1 %847, %v244_v21   ;;  %v240_v21 = vld [vmem:[%s1090_s3 + $0x68] sm:$0xff] }
  0x14   :  { %718 = vmatmul.mubr.msk.f32.gmra.mrb[6].mxu0 %vm85_vm1, %v36_v19  ;;  %261 = vperm.xlu0 %846, %v243_v20   ;;  %v238_v19 = vld [vmem:[%s1090_s3 + $0x58] sm:$0xff]  ;;  %v239_v20 = vld [vmem:[%s1090_s3 + $0x60] sm:$0xff] }
  0x17   :  { %276 = vperm.xlu1 %847, %v246_v23   ;;  %v242_v23 = vld [vmem:[%s1090_s3 + $0x78] sm:$0xff] }
  0x18   :  { %271 = vperm.xlu0 %846, %v245_v22   ;;  %v241_v22 = vld [vmem:[%s1090_s3 + $0x70] sm:$0xff] }
  0x1b   :  { %286 = vperm.xlu1 %847, %v248_v25   ;;  %v854_v25 = vmov 0.0  }
  0x1c   :  { %281 = vperm.xlu0 %846, %v247_v24   ;;  %v852_v24 = vmov 0.0|0.0   ;;  %792 = vmatprep.mubr.msk.f32.mxu0 %vm853_vm5, %v854_v25 }
  0x1d   :  { %817 = vmatprep.subr.bf16.mxu0 %v852_v24 }
  0x1f   :  { %296 = vperm.xlu1 %847, %v250_v27  }
  0x20   :  { %291 = vperm.xlu0 %846, %v249_v26  }
  0x23   :  { %306 = vperm.xlu1 %847, %v252_v29  }
  0x24   :  { %301 = vperm.xlu0 %846, %v251_v28  }
  0x27   :  { %316 = vperm.xlu1 %847, %v254_v31  }
  0x28   :  { %311 = vperm.xlu0 %846, %v253_v30  }
  0x2b   :  { %326 = vperm.xlu1 %847, %v256_v33  }
  0x2c   :  { %321 = vperm.xlu0 %846, %v255_v32  }
  0x2f   :  { %336 = vperm.xlu1 %847, %v258_v35  }
  0x30   :  { %331 = vperm.xlu0 %846, %v257_v34  }
  0x82   :  { %v58_v38 = vpop.permute.xlu1 %57 }
  0x83   :  { %v48_v37 = vpop.permute.xlu0 %47 }
  0x86   :  { %v63_v40 = vpop.permute.xlu1 %62 }
  0x87   :  { %v53_v39 = vpop.permute.xlu0 %52 }
  0x8a   :  { %v73_v50 = vpop.permute.xlu1 %72 }
  0x8b   :  { %v68_v53 = vpop.permute.xlu0 %67 }
  0x8e   :  { %v83_v62 = vpop.permute.xlu1 %82 }
  0x8f   :  { %v78_v1 = vpop.permute.xlu0 %77 }
  0x92   :  { %v267_v26 = vpop.permute.xlu1 %266 }
  0x93   :  { %v262_v27 = vpop.permute.xlu0 %261 }
  0x96   :  { %v277_v28 = vpop.permute.xlu1 %276 }
  0x97   :  { %v272_v29 = vpop.permute.xlu0 %271 }
  0x9a   :  { %v287_v30 = vpop.permute.xlu1 %286 }
  0x9b   :  { %v282_v31 = vpop.permute.xlu0 %281 }
  0xdb   :  { %v710_v41 = vpop.f32.mrb[0].mxu0 }
  0xdc   :  { %v186_v42 = vadd.f32 %v710_v41, %v53_v39  ;;  %v180_v43 = vpop.f32.mrb[1].mxu0 }
  0xdd   :  { %v181_v44 = vadd.f32 %v180_v43, %v48_v37  ;;  %v297_v37 = vpop.permute.xlu1 %296 }
  0xde   :  { %v220_v45 = vmax.f32 %v186_v42, 0.0 }
  0xdf   :  { %v219_v46 = vmax.f32 %v181_v44, 0.0  ;;  %v713_v47 = vpop.f32.mrb[2].mxu0 }
  0xe0   :  { %v196_v48 = vadd.f32 %v713_v47, %v63_v40  ;;  %v190_v49 = vpop.f32.mrb[3].mxu0  ;;  %v292_v40 = vpop.permute.xlu0 %291 }
  0xe1   :  { %v191_v51 = vadd.f32 %v190_v49, %v58_v38  ;;  %v801_v52 = vpack.c.bf16 %v220_v45, %v219_v46 }
  0xe2   :  { %v222_v54 = vmax.f32 %v196_v48, 0.0 }
  0xe3   :  { %v221_v55 = vmax.f32 %v191_v51, 0.0  ;;  %v716_v56 = vpop.f32.mrb[4].mxu0  ;;  %802 = vmatprep.subr.bf16.mxu1 %v801_v52 }
  0xe4   :  { %v206_v57 = vadd.f32 %v716_v56, %v73_v50  ;;  %v200_v58 = vpop.f32.mrb[5].mxu0  ;;  %804 = vmatpush3.bf16.msra.mxu1 %v801_v52  ;;  %v307_v50 = vpop.permute.xlu1 %306 }
  0xe5   :  { %v805_v59 = vpack.c.bf16 %v222_v54, %v221_v55  ;;  %v201_v60 = vadd.f32 %v200_v58, %v68_v53  ;;  %v302_v53 = vpop.permute.xlu0 %301 }
  0xe6   :  { %v224_v61 = vmax.f32 %v206_v57, 0.0 }
  0xe7   :  { %v223_v63 = vmax.f32 %v201_v60, 0.0  ;;  %v719_v0 = vpop.f32.mrb[6].mxu0  ;;  %806 = vmatprep.subr.bf16.mxu1 %v805_v59 }
  0xe8   :  { %v216_v2 = vadd.f32 %v719_v0, %v83_v62  ;;  %v210_v3 = vpop.f32.mrb[7].mxu0  ;;  %808 = vmatpush3.bf16.msra.mxu1 %v805_v59  ;;  %v317_v62 = vpop.permute.xlu1 %316 }
  0xe9   :  { %v809_v4 = vpack.c.bf16 %v224_v61, %v223_v63  ;;  %v211_v5 = vadd.f32 %v210_v3, %v78_v1  ;;  %v312_v1 = vpop.permute.xlu0 %311 }
  0xea   :  { %v226_v6 = vmax.f32 %v216_v2, 0.0 }
  0xeb   :  { %v225_v7 = vmax.f32 %v211_v5, 0.0  ;;  %810 = vmatprep.subr.bf16.mxu1 %v809_v4 }
  0xec   :  { %812 = vmatpush3.bf16.msra.mxu1 %v809_v4 }
  0xed   :  { %v813_v8 = vpack.c.bf16 %v226_v6, %v225_v7 }
  0xef   :  { %814 = vmatprep.subr.bf16.mxu1 %v813_v8 }
  0xf0   :  { %816 = vmatpush3.bf16.msra.mxu1 %v813_v8 }
  0xf3   :  { %737 = vmatmul.mubr.msk.f32.vlgmr.msra.gmra.mrb[0].mxu1 %vm339_vm4, %v228_v9 }
  0xf4   :  { %739 = vmatprep.mubr.msk.f32.mxu1 %vm339_vm4, %v229_v10 }
  0xf7   :  { %740 = vmatmul.mubr.msk.f32.gmra.mrb[2].mxu1 %vm339_vm4, %v230_v11  ;;  %v327_v11 = vpop.permute.xlu1 %326 }
  0xf8   :  { %742 = vmatprep.mubr.msk.f32.mxu1 %vm339_vm4, %v231_v12 }
  0xfb   :  { %743 = vmatmul.mubr.msk.f32.gmra.mrb[4].mxu1 %vm339_vm4, %v232_v13 }
  0xfc   :  { %745 = vmatprep.mubr.msk.f32.mxu1 %vm339_vm4, %v233_v14  ;;  %v322_v14 = vpop.permute.xlu0 %321 }
  0xff   :  { %746 = vmatmul.mubr.msk.f32.gmra.mrb[6].mxu1 %vm339_vm4, %v234_v15 }
 0x100   :  { %748 = vmatprep.mubr.msk.f32.mxu1 %vm339_vm4, %v235_v16 }
 0x103   :  { %749 = vmatmul.mubr.msk.f32.gmra.mrb[8].mxu1 %vm339_vm4, %v236_v17 }
 0x104   :  { %751 = vmatprep.mubr.msk.f32.mxu1 %vm339_vm4, %v237_v18 }
 0x107   :  { %752 = vmatmul.mubr.msk.f32.gmra.mrb[10].mxu1 %vm339_vm4, %v238_v19 }
 0x108   :  { %754 = vmatprep.mubr.msk.f32.mxu1 %vm339_vm4, %v239_v20 }
 0x10b   :  { %755 = vmatmul.mubr.msk.f32.gmra.mrb[12].mxu1 %vm339_vm4, %v240_v21 }
 0x10c   :  { %757 = vmatprep.mubr.msk.f32.mxu1 %vm339_vm4, %v241_v22 }
 0x10f   :  { %758 = vmatmul.mubr.msk.f32.gmra.mrb[14].mxu1 %vm339_vm4, %v242_v23  ;;  %v337_v23 = vpop.permute.xlu1 %336 }
 0x1c6   :  { %v738_v32 = vpop.f32.mrb[0].mxu1 }
 0x1c7   :  { %v460_v33 = vadd.f32 %v738_v32, %v267_v26  ;;  %v454_v34 = vpop.f32.mrb[1].mxu1 }
 0x1c8   :  { %v455_v35 = vadd.f32 %v454_v34, %v262_v27  ;;  %v332_v27 = vpop.permute.xlu0 %331 }
 0x1c9   :  { %v534_v36 = vmax.f32 %v460_v33, 0.0 }
 0x1ca   :  { %v533_v38 = vmax.f32 %v455_v35, 0.0  ;;  %v741_v39 = vpop.f32.mrb[2].mxu1  ;;  %v549_v35 = vld [vmem:[%s1091_s5] sm:$0x1] }
 0x1cb   :  { %v470_v41 = vadd.f32 %v741_v39, %v277_v28  ;;  %v464_v42 = vpop.f32.mrb[3].mxu1 }
 0x1cc   :  { %v818_v43 = vpack.c.bf16 %v534_v36, %v533_v38  ;;  %v465_v44 = vadd.f32 %v464_v42, %v272_v29  ;;  %v551_v36 = vstv %s1092_s6 }
 0x1cd   :  { %v536_v45 = vmax.f32 %v470_v41, 0.0 }
 0x1ce   :  { %v535_v46 = vmax.f32 %v465_v44, 0.0  ;;  %v744_v47 = vpop.f32.mrb[4].mxu1  ;;  %819 = vmatpush3.bf16.msra.mxu0 %v818_v43 }
 0x1cf   :  { %v480_v48 = vadd.f32 %v744_v47, %v287_v30  ;;  %v474_v49 = vpop.f32.mrb[5].mxu1  ;;  %820 = vmatprep.subr.bf16.mxu0 %v852_v24 }
 0x1d0   :  { %v821_v51 = vpack.c.bf16 %v536_v45, %v535_v46  ;;  %v475_v52 = vadd.f32 %v474_v49, %v282_v31 }
 0x1d1   :  { %v538_v54 = vmax.f32 %v480_v48, 0.0 }
 0x1d2   :  { %v537_v55 = vmax.f32 %v475_v52, 0.0  ;;  %v747_v56 = vpop.f32.mrb[6].mxu1  ;;  %822 = vmatpush3.bf16.msra.mxu0 %v821_v51 }
 0x1d3   :  { %v490_v57 = vadd.f32 %v747_v56, %v297_v37  ;;  %v484_v58 = vpop.f32.mrb[7].mxu1  ;;  %823 = vmatprep.subr.bf16.mxu0 %v852_v24 }
 0x1d4   :  { %v824_v59 = vpack.c.bf16 %v538_v54, %v537_v55  ;;  %v485_v60 = vadd.f32 %v484_v58, %v292_v40 }
 0x1d5   :  { %v540_v61 = vmax.f32 %v490_v57, 0.0 }
 0x1d6   :  { %v539_v63 = vmax.f32 %v485_v60, 0.0  ;;  %v750_v0 = vpop.f32.mrb[8].mxu1  ;;  %825 = vmatpush3.bf16.msra.mxu0 %v824_v59 }
 0x1d7   :  { %v500_v2 = vadd.f32 %v750_v0, %v307_v50  ;;  %v494_v3 = vpop.f32.mrb[9].mxu1  ;;  %826 = vmatprep.subr.bf16.mxu0 %v852_v24 }
 0x1d8   :  { %v827_v4 = vpack.c.bf16 %v540_v61, %v539_v63  ;;  %v495_v5 = vadd.f32 %v494_v3, %v302_v53 }
 0x1d9   :  { %v542_v6 = vmax.f32 %v500_v2, 0.0 }
 0x1da   :  { %v541_v7 = vmax.f32 %v495_v5, 0.0  ;;  %v753_v8 = vpop.f32.mrb[10].mxu1  ;;  %828 = vmatpush3.bf16.msra.mxu0 %v827_v4 }
 0x1db   :  { %v510_v9 = vadd.f32 %v753_v8, %v317_v62  ;;  %v504_v10 = vpop.f32.mrb[11].mxu1  ;;  %829 = vmatprep.subr.bf16.mxu0 %v852_v24 }
 0x1dc   :  { %v830_v12 = vpack.c.bf16 %v542_v6, %v541_v7  ;;  %v505_v13 = vadd.f32 %v504_v10, %v312_v1 }
 0x1dd   :  { %v544_v15 = vmax.f32 %v510_v9, 0.0 }
 0x1de   :  { %v543_v16 = vmax.f32 %v505_v13, 0.0  ;;  %v756_v17 = vpop.f32.mrb[12].mxu1  ;;  %831 = vmatpush3.bf16.msra.mxu0 %v830_v12 }
 0x1df   :  { %v520_v18 = vadd.f32 %v756_v17, %v327_v11  ;;  %v514_v19 = vpop.f32.mrb[13].mxu1  ;;  %832 = vmatprep.subr.bf16.mxu0 %v852_v24 }
 0x1e0   :  { %v833_v20 = vpack.c.bf16 %v544_v15, %v543_v16  ;;  %v515_v21 = vadd.f32 %v514_v19, %v322_v14 }
 0x1e1   :  { %v546_v22 = vmax.f32 %v520_v18, 0.0 }
 0x1e2   :  { %v545_v25 = vmax.f32 %v515_v21, 0.0  ;;  %v759_v26 = vpop.f32.mrb[14].mxu1  ;;  %834 = vmatpush3.bf16.msra.mxu0 %v833_v20 }
 0x1e3   :  { %v530_v28 = vadd.f32 %v759_v26, %v337_v23  ;;  %v524_v29 = vpop.f32.mrb[15].mxu1  ;;  %835 = vmatprep.subr.bf16.mxu0 %v852_v24 }
 0x1e4   :  { %v836_v30 = vpack.c.bf16 %v546_v22, %v545_v25  ;;  %v525_v31 = vadd.f32 %v524_v29, %v332_v27 }
 0x1e5   :  { %v548_v32 = vmax.f32 %v530_v28, 0.0 }
 0x1e6   :  { %v547_v33 = vmax.f32 %v525_v31, 0.0  ;;  %837 = vmatpush3.bf16.msra.mxu0 %v836_v30 }
 0x1e7   :  { %838 = vmatprep.subr.bf16.mxu0 %v852_v24 }
 0x1e8   :  { %v839_v34 = vpack.c.bf16 %v548_v32, %v547_v33 }
 0x1ea   :  { %840 = vmatpush3.bf16.msra.mxu0 %v839_v34 }
 0x1ed   :  { %793 = vmatmul.mubr.f32.vlgmr.msra.gmra.mrb[8].mxu0 %v549_v35 }
 0x2c0   :  { %v618_v37 = vpop.f32.mrb[8].mxu0 }
 0x2c1   :  { %v619_v38 = vadd.f32 %v618_v37, %v551_v36  ;;  %v794_v39 = vpop.f32.mrb[9].mxu0 }
 0x2c3   :  { %848 = vtanh.f32 %v619_v38 }
 0x2cd   :  { %v849_v40 = vpop.eup %848 }
 0x2ce   :  { %623 = vst [vmem:[%s1093_s7] sm:$0x1] %v849_v40 }

</bundles_post_ra>
